<compile_context>
chip_gen: v5e
topology: v5e:2x2
jax: 0.10.0
libtpu: 0.0.40
codegen_flags: <defaults>
</compile_context>

<pallas_src>
import functools

import jax
import jax.numpy as jnp
from jax.experimental import pallas as pl
from jax.experimental.pallas import tpu as pltpu


def _round_up(a: int, b: int) -> int:
    return ((a + b - 1) // b) * b


def _stats_pooling_kernel(x_ref, o_ref, sum_ref, sumsq_ref, *, t_true: int):
    # Grid = (B-tiles, D-tiles, T-tiles); T is the innermost (reduction) axis.
    k = pl.program_id(2)

    @pl.when(k == 0)
    def _():
        sum_ref[...] = jnp.zeros_like(sum_ref)
        sumsq_ref[...] = jnp.zeros_like(sumsq_ref)

    # Per-tile upcast: only this (bt, tt, dt) tile is ever live in f32.
    x = x_ref[...].astype(jnp.float32)
    sum_ref[...] += jnp.sum(x, axis=1)            # (bt, dt)
    sumsq_ref[...] += jnp.sum(x * x, axis=1)      # (bt, dt)

    @pl.when(k == pl.num_programs(2) - 1)
    def _():
        s = sum_ref[...]
        ss = sumsq_ref[...]
        inv_t = jnp.float32(1.0 / t_true)
        mean = s * inv_t
        # Unbiased variance (ddof=1).  T == 1 -> NaN, matching torch.std.
        inv_tm1 = (jnp.float32(1.0 / (t_true - 1)) if t_true > 1
                   else jnp.float32(jnp.nan))
        var = (ss - s * mean) * inv_tm1
        # Guard tiny negative values from cancellation before sqrt.
        var = jnp.maximum(var, 0.0)
        o_ref[...] = (mean + jnp.sqrt(var)).astype(o_ref.dtype)


def _choose_tiles(B, T, D, itemsize):
    dt = min(512, _round_up(D, 128))   # lane-dense, multiple of 128
    tt = min(512, _round_up(T, 8))     # sublane-friendly, multiple of 8
    bt = 8
    # Cap each input buffer at ~4 MiB (double-buffered -> ~8 MiB) so the
    # pipeline fits comfortably in scoped VMEM on v5e/v6e/v7x alike.
    budget = 4 * 1024 * 1024
    while bt * tt * dt * itemsize > budget:
        if dt > 128:
            dt //= 2
        elif tt > 8:
            tt = max(8, _round_up(tt // 2, 8))
        else:
            break
    return bt, tt, dt


def stats_pooling(x: jax.Array) -> jax.Array:
    """x: (B, T, D) -> (B, D) = mean(x, axis=1) + std(x, axis=1, ddof=1)."""
    B, T, D = x.shape
    out_dtype = x.dtype

    bt, tt, dt = _choose_tiles(B, T, D, jnp.dtype(x.dtype).itemsize)

    B_pad = _round_up(B, bt)
    T_pad = _round_up(T, tt)
    D_pad = _round_up(D, dt)
    if (B_pad, T_pad, D_pad) != (B, T, D):
        # Zero padding is harmless: zeros add nothing to sum / sumsq and the
        # kernel divides by the true T; padded B rows / D cols are sliced off.
        x = jnp.pad(x, ((0, B_pad - B), (0, T_pad - T), (0, D_pad - D)))

    grid = (B_pad // bt, D_pad // dt, T_pad // tt)

    out = pl.pallas_call(
        functools.partial(_stats_pooling_kernel, t_true=T),
        out_shape=jax.ShapeDtypeStruct((B_pad, D_pad), out_dtype),
        grid_spec=pltpu.PrefetchScalarGridSpec(
            num_scalar_prefetch=0,
            grid=grid,
            in_specs=[pl.BlockSpec((bt, tt, dt), lambda b, d, t: (b, t, d))],
            # Same output block across the T axis -> resident accumulator tile.
            out_specs=pl.BlockSpec((bt, dt), lambda b, d, t: (b, d)),
            scratch_shapes=[
                pltpu.VMEM((bt, dt), jnp.float32),   # running sum
                pltpu.VMEM((bt, dt), jnp.float32),   # running sum of squares
            ],
        ),
        compiler_params=pltpu.CompilerParams(
            dimension_semantics=("parallel", "parallel", "arbitrary"),
            vmem_limit_bytes=32 * 1024 * 1024,
        ),
    )(x)
    return out[:B, :D]


def _stats_pooling_ref(x: jax.Array) -> jax.Array:
    mean = jnp.mean(x, axis=1)
    std = jnp.std(x, axis=1, ddof=1)
    return mean + std


if __name__ == "__main__":
    key = jax.random.PRNGKey(0)

    # Small shape matching the module's (batch, seq, feat) convention.
    B, T, D = 2, 8, 32
    x = jax.random.normal(key, (B, T, D), dtype=jnp.float32)
    out = jax.block_until_ready(stats_pooling(x))
    ref = _stats_pooling_ref(x)
    assert out.shape == (B, D), out.shape
    assert jnp.allclose(out, ref, atol=1e-5, rtol=1e-5), "mismatch (small shape)"

    # A second shape that exercises B/T/D padding and a multi-step T reduction.
    x2 = (jax.random.normal(jax.random.PRNGKey(1), (3, 1030, 200),
                            dtype=jnp.float32) * 2.0 + 0.5)
    out2 = jax.block_until_ready(stats_pooling(x2))
    ref2 = _stats_pooling_ref(x2)
    assert out2.shape == (3, 200), out2.shape
    assert jnp.allclose(out2, ref2, atol=1e-3, rtol=1e-3), "mismatch (tiled shape)"

    print("KERNEL_OK")
</pallas_src>

<mosaic_0001>
module attributes {stable_mosaic.version = 11 : i64} {
  func.func @_stats_pooling_kernel(%arg0: i32, %arg1: i32, %arg2: i32, %arg3: memref<8x8x128xf32, #tpu.memory_space<vmem>>, %arg4: memref<8x128xf32, #tpu.memory_space<vmem>>, %arg5: memref<8x128xf32, #tpu.memory_space<vmem>>, %arg6: memref<8x128xf32, #tpu.memory_space<vmem>>) attributes {dimension_semantics = [#tpu.dimension_semantics<parallel>, #tpu.dimension_semantics<parallel>, #tpu.dimension_semantics<arbitrary>], iteration_bounds = array<i64: 1, 1, 1>, scalar_prefetch = 0 : i64, scratch_operands = 2 : i64, tpu.core_type = #tpu.core_type<tc>, window_params = [{transform_indices = @transform_0, window_bounds = array<i64: 8, 8, 128>}, {transform_indices = @transform_1, window_bounds = array<i64: 8, 128>}]} {
    %c0_i32 = arith.constant 0 : i32
    %0 = arith.cmpi eq, %arg2, %c0_i32 : i32
    %1 = arith.extui %0 : i1 to i32
    %c0_i32_0 = arith.constant 0 : i32
    %2 = arith.cmpi ne, %1, %c0_i32_0 : i32
    scf.if %2 {
      %cst_14 = arith.constant 0.000000e+00 : f32
      %16 = vector.broadcast %cst_14 : f32 to vector<8x128xf32>
      %c0_15 = arith.constant 0 : index
      %c0_16 = arith.constant 0 : index
      %17 = vector.load %arg5[%c0_15, %c0_16] : memref<8x128xf32, #tpu.memory_space<vmem>>, vector<8x128xf32>
      tpu.vector_store %arg5[%c0_15, %c0_16], %16 {strides = array<i32>} : memref<8x128xf32, #tpu.memory_space<vmem>>, vector<8x128xf32>,
      %cst_17 = arith.constant 0.000000e+00 : f32
      %18 = vector.broadcast %cst_17 : f32 to vector<8x128xf32>
      %c0_18 = arith.constant 0 : index
      %c0_19 = arith.constant 0 : index
      %19 = vector.load %arg6[%c0_18, %c0_19] : memref<8x128xf32, #tpu.memory_space<vmem>>, vector<8x128xf32>
      tpu.vector_store %arg6[%c0_18, %c0_19], %18 {strides = array<i32>} : memref<8x128xf32, #tpu.memory_space<vmem>>, vector<8x128xf32>,
    } else {
    }
    %c0 = arith.constant 0 : index
    %c0_1 = arith.constant 0 : index
    %c0_2 = arith.constant 0 : index
    %3 = vector.load %arg3[%c0, %c0_1, %c0_2] : memref<8x8x128xf32, #tpu.memory_space<vmem>>, vector<8x8x128xf32>
    %c0_3 = arith.constant 0 : index
    %c0_4 = arith.constant 0 : index
    %4 = vector.load %arg5[%c0_3, %c0_4] : memref<8x128xf32, #tpu.memory_space<vmem>>, vector<8x128xf32>
    %cst = arith.constant dense<0.000000e+00> : vector<8x128xf32>
    %5 = vector.multi_reduction <add>, %3, %cst [1] : vector<8x8x128xf32> to vector<8x128xf32>
    %6 = arith.addf %4, %5 : vector<8x128xf32>
    %c0_5 = arith.constant 0 : index
    %c0_6 = arith.constant 0 : index
    %7 = vector.load %arg5[%c0_5, %c0_6] : memref<8x128xf32, #tpu.memory_space<vmem>>, vector<8x128xf32>
    tpu.vector_store %arg5[%c0_5, %c0_6], %6 {strides = array<i32>} : memref<8x128xf32, #tpu.memory_space<vmem>>, vector<8x128xf32>,
    %c0_7 = arith.constant 0 : index
    %c0_8 = arith.constant 0 : index
    %8 = vector.load %arg6[%c0_7, %c0_8] : memref<8x128xf32, #tpu.memory_space<vmem>>, vector<8x128xf32>
    %9 = arith.mulf %3, %3 : vector<8x8x128xf32>
    %cst_9 = arith.constant dense<0.000000e+00> : vector<8x128xf32>
    %10 = vector.multi_reduction <add>, %9, %cst_9 [1] : vector<8x8x128xf32> to vector<8x128xf32>
    %11 = arith.addf %8, %10 : vector<8x128xf32>
    %c0_10 = arith.constant 0 : index
    %c0_11 = arith.constant 0 : index
    %12 = vector.load %arg6[%c0_10, %c0_11] : memref<8x128xf32, #tpu.memory_space<vmem>>, vector<8x128xf32>
    tpu.vector_store %arg6[%c0_10, %c0_11], %11 {strides = array<i32>} : memref<8x128xf32, #tpu.memory_space<vmem>>, vector<8x128xf32>,
    %c0_i32_12 = arith.constant 0 : i32
    %13 = arith.cmpi eq, %arg2, %c0_i32_12 : i32
    %14 = arith.extui %13 : i1 to i32
    %c0_i32_13 = arith.constant 0 : i32
    %15 = arith.cmpi ne, %14, %c0_i32_13 : i32
    scf.if %15 {
      %c0_14 = arith.constant 0 : index
      %c0_15 = arith.constant 0 : index
      %16 = vector.load %arg5[%c0_14, %c0_15] : memref<8x128xf32, #tpu.memory_space<vmem>>, vector<8x128xf32>
      %c0_16 = arith.constant 0 : index
      %c0_17 = arith.constant 0 : index
      %17 = vector.load %arg6[%c0_16, %c0_17] : memref<8x128xf32, #tpu.memory_space<vmem>>, vector<8x128xf32>
      %cst_18 = arith.constant 1.250000e-01 : f32
      %18 = vector.broadcast %cst_18 : f32 to vector<8x128xf32>
      %19 = arith.mulf %16, %18 : vector<8x128xf32>
      %20 = arith.mulf %16, %19 : vector<8x128xf32>
      %21 = arith.subf %17, %20 : vector<8x128xf32>
      %cst_19 = arith.constant 0.142857149 : f32
      %22 = vector.broadcast %cst_19 : f32 to vector<8x128xf32>
      %23 = arith.mulf %21, %22 : vector<8x128xf32>
      %cst_20 = arith.constant 0.000000e+00 : f32
      %24 = vector.broadcast %cst_20 : f32 to vector<8x128xf32>
      %25 = arith.maximumf %23, %24 : vector<8x128xf32>
      %26 = math.sqrt %25 : vector<8x128xf32>
      %27 = arith.addf %19, %26 : vector<8x128xf32>
      %c0_21 = arith.constant 0 : index
      %c0_22 = arith.constant 0 : index
      %28 = vector.load %arg4[%c0_21, %c0_22] : memref<8x128xf32, #tpu.memory_space<vmem>>, vector<8x128xf32>
      tpu.vector_store %arg4[%c0_21, %c0_22], %27 {strides = array<i32>} : memref<8x128xf32, #tpu.memory_space<vmem>>, vector<8x128xf32>,
    } else {
    }
    return
  }
  func.func @transform_0(%arg0: i32, %arg1: i32, %arg2: i32) -> (i32, i32, i32) {
    %c0_i32 = arith.constant 0 : i32
    return %arg0, %arg2, %arg1 : i32, i32, i32
  }
  func.func @transform_1(%arg0: i32, %arg1: i32, %arg2: i32) -> (i32, i32) {
    %c0_i32 = arith.constant 0 : i32
    return %arg0, %arg1 : i32, i32
  }
}

</mosaic_0001>

<bundles_post_ra>
// kernel: tpu_custom_call.1
= control target key start
LH: loop header
LB: loop body
LE: loop exit
PB: predicated region body
PF: predicated region fallthrough
CT: control target
= control target key end

     0   :  { %6 = vsyncpa [#allocation5], 0  ;;  %s359_s0 = inlined_call_operand.hbm [shape: f32[8,8,128], index: 0, kind: input, shape index: {}]   ;;  %s360_s1 = inlined_call_operand.hbm [shape: f32[8,128], index: 1, kind: output, shape index: {}]  }
   0x1   :  { %7 = vsyncpa [#allocation6], 0  ;;  %s12_s8 = sshll.u32 %s359_s0, 4  ;;  %s287_s9 = smov [#allocation4]   ;;  %s13_s8 = int_to_ptr.hbm [resolvable:$true] %s12_s8 }
   0x2   :  { %s14_s10 = sshll.u32 %s287_s9, 4  ;;  %s288_s11 = smov 128   ;;  %s15_s10 = int_to_ptr.vmem [resolvable:$true] %s14_s10 }
   0x3   :  { %s289_s12 = smov 8  }
   0x4   :  { %20 = dma.hbm_to_vmem [thread:$0]  %s13_s8, 1024, %s15_s10, [#allocation5], %s288_s11, %s288_s11, %s289_s12  }
   0x5   :  { %283 = dma.done.wait [#allocation5], 1024  }
   0x6   :  { %284 = vsyncadd [#allocation5], 4294966272  ;;  %v31_v0 = vld [vmem:[#allocation4] sm:$0xff]  ;;  %v32_v1 = vld [vmem:[#allocation4 + $0x8] sm:$0xff]  ;;  %vm96_vm0 = vcmask 1041409   ;;  %vm98_vm1 = vcmask 1042434  }
   0x7   :  { %v304_v2 = vld [vmem:[#allocation4 + $0x10] sm:$0xff]  ;;  %v306_v3 = vld [vmem:[#allocation4 + $0x18] sm:$0xff]  ;;  %v308_v4 = vld [vmem:[#allocation4 + $0x20] sm:$0xff]  ;;  %v40_v6 = vrot.slane %v31_v0, 4  ;;  %v46_v7 = vrot.slane %v32_v1, 4  ;;  %v313_v9 = vmul.f32 %v31_v0, %v31_v0  ;;  %v320_v15 = vmul.f32 %v32_v1, %v32_v1  ;;  %s290_s0 = smov [#allocation7]  }
   0x8   :  { %v310_v5 = vld [vmem:[#allocation4 + $0x28] sm:$0xff]  ;;  %v52_v8 = vrot.slane %v304_v2, 4  ;;  %v315_v10 = vld [vmem:[#allocation4 + $0x30] sm:$0xff]  ;;  %v38_v11 = vld [vmem:[#allocation4 + $0x38] sm:$0xff]  ;;  %v58_v12 = vrot.slane %v306_v3, 4  ;;  %v64_v13 = vrot.slane %v308_v4, 4  ;;  %v116_v58 = vmul.f32 %v304_v2, %v304_v2 }
   0x9   :  { %v70_v14 = vrot.slane %v310_v5, 4  ;;  %v41_v16 = vadd.f32 %v40_v6, %v31_v0  ;;  %v47_v17 = vadd.f32 %v46_v7, %v32_v1  ;;  %v76_v19 = vrot.slane %v315_v10, 4  ;;  %s217_s13 = sshll.u32 %s290_s0, 4  ;;  %s219_s16 = sshll.u32 %s360_s1, 4  ;;  %s218_s13 = int_to_ptr.vmem [resolvable:$true] %s217_s13  ;;  %s220_s16 = int_to_ptr.hbm [resolvable:$true] %s219_s16 }
   0xa   :  { %v53_v18 = vadd.f32 %v52_v8, %v304_v2  ;;  %v59_v20 = vadd.f32 %v58_v12, %v306_v3  ;;  %v65_v21 = vadd.f32 %v64_v13, %v308_v4  ;;  %v82_v23 = vrot.slane %v38_v11, 4 }
   0xb   :  { %v71_v22 = vadd.f32 %v70_v14, %v310_v5  ;;  %vm100_vm2 = vcmask 1043459   ;;  %v42_v24 = vrot.slane %v41_v16, 2  ;;  %v48_v25 = vrot.slane %v47_v17, 2 }
   0xc   :  { %v54_v26 = vrot.slane %v53_v18, 2  ;;  %v77_v27 = vadd.f32 %v76_v19, %v315_v10  ;;  %vm102_vm3 = vcmask 1044484   ;;  %v60_v28 = vrot.slane %v59_v20, 2 }
   0xd   :  { %v66_v29 = vrot.slane %v65_v21, 2  ;;  %v72_v30 = vrot.slane %v71_v22, 2  ;;  %v83_v31 = vadd.f32 %v82_v23, %v38_v11  ;;  %vm104_vm4 = vcmask 1045509  }
   0xe   :  { %v43_v32 = vadd.f32 %v42_v24, %v41_v16  ;;  %v49_v33 = vadd.f32 %v48_v25, %v47_v17  ;;  %v55_v34 = vadd.f32 %v54_v26, %v53_v18  ;;  %v78_v35 = vrot.slane %v77_v27, 2 }
   0xf   :  { %vm106_vm5 = vcmask 1046534   ;;  %v61_v36 = vadd.f32 %v60_v28, %v59_v20  ;;  %v67_v37 = vadd.f32 %v66_v29, %v65_v21  ;;  %v73_v38 = vadd.f32 %v72_v30, %v71_v22 }
  0x10   :  { %v84_v39 = vrot.slane %v83_v31, 2  ;;  %vm108_vm6 = vcmask 1047559   ;;  %v44_v40 = vrot.slane %v43_v32, 1  ;;  %v50_v41 = vrot.slane %v49_v33, 1 }
  0x11   :  { %v56_v42 = vrot.slane %v55_v34, 1  ;;  %v79_v43 = vadd.f32 %v78_v35, %v77_v27  ;;  %v62_v44 = vrot.slane %v61_v36, 1  ;;  %v68_v45 = vrot.slane %v67_v37, 1 }
  0x12   :  { %v74_v46 = vrot.slane %v73_v38, 1  ;;  %v85_v47 = vadd.f32 %v84_v39, %v83_v31  ;;  %v45_v48 = vadd.f32 %v44_v40, %v43_v32  ;;  %v51_v49 = vadd.f32 %v50_v41, %v49_v33 }
  0x13   :  { %v57_v50 = vadd.f32 %v56_v42, %v55_v34  ;;  %v80_v51 = vrot.slane %v79_v43, 1  ;;  %v63_v52 = vadd.f32 %v62_v44, %v61_v36  ;;  %v69_v53 = vadd.f32 %v68_v45, %v67_v37 }
  0x14   :  { %v75_v54 = vadd.f32 %v74_v46, %v73_v38  ;;  %v86_v55 = vrot.slane %v85_v47, 1  ;;  %v97_v57 = vsel %vm96_vm0, %v51_v49, %v45_v48  ;;  %v117_v59 = vmul.f32 %v306_v3, %v306_v3 }
  0x15   :  { %v81_v56 = vadd.f32 %v80_v51, %v79_v43  ;;  %v99_v61 = vsel %vm98_vm1, %v57_v50, %v97_v57  ;;  %v118_v62 = vmul.f32 %v308_v4, %v308_v4  ;;  %v119_v63 = vmul.f32 %v310_v5, %v310_v5 }
  0x16   :  { %v87_v60 = vadd.f32 %v86_v55, %v85_v47  ;;  %v101_v0 = vsel %vm100_vm2, %v63_v52, %v99_v61  ;;  %v120_v1 = vmul.f32 %v315_v10, %v315_v10  ;;  %v121_v6 = vmul.f32 %v38_v11, %v38_v11 }
  0x17   :  { %v122_v2 = vrot.slane %v313_v9, 4  ;;  %v103_v7 = vsel %vm102_vm3, %v69_v53, %v101_v0  ;;  %v128_v3 = vrot.slane %v320_v15, 4  ;;  %v134_v8 = vrot.slane %v116_v58, 4 }
  0x18   :  { %v140_v12 = vrot.slane %v117_v59, 4  ;;  %v105_v13 = vsel %vm104_vm4, %v75_v54, %v103_v7  ;;  %v146_v14 = vrot.slane %v118_v62, 4  ;;  %v152_v5 = vrot.slane %v119_v63, 4 }
  0x19   :  { %v123_v4 = vadd.f32 %v122_v2, %v313_v9  ;;  %v107_v16 = vsel %vm106_vm5, %v81_v56, %v105_v13  ;;  %v129_v17 = vadd.f32 %v128_v3, %v320_v15  ;;  %v135_v10 = vadd.f32 %v134_v8, %v116_v58 }
  0x1a   :  { %v141_v11 = vadd.f32 %v140_v12, %v117_v59  ;;  %v109_v18 = vsel %vm108_vm6, %v87_v60, %v107_v16  ;;  %v147_v20 = vadd.f32 %v146_v14, %v118_v62  ;;  %v153_v21 = vadd.f32 %v152_v5, %v119_v63 }
  0x1b   :  { %v124_v19 = vrot.slane %v123_v4, 2  ;;  %v130_v22 = vrot.slane %v129_v17, 2  ;;  %v136_v23 = vrot.slane %v135_v10, 2  ;;  %v158_v25 = vrot.slane %v120_v1, 4 }
  0x1c   :  { %v142_v24 = vrot.slane %v141_v11, 2  ;;  %v148_v27 = vrot.slane %v147_v20, 2  ;;  %v154_v9 = vrot.slane %v153_v21, 2  ;;  %v164_v28 = vrot.slane %v121_v6, 4 }
  0x1d   :  { %v125_v26 = vadd.f32 %v124_v19, %v123_v4  ;;  %v131_v29 = vadd.f32 %v130_v22, %v129_v17  ;;  %v137_v30 = vadd.f32 %v136_v23, %v135_v10  ;;  %v159_v32 = vadd.f32 %v158_v25, %v120_v1 }
  0x1e   :  { %v143_v31 = vadd.f32 %v142_v24, %v141_v11  ;;  %v149_v33 = vadd.f32 %v148_v27, %v147_v20  ;;  %v155_v34 = vadd.f32 %v154_v9, %v153_v21  ;;  %v165_v35 = vadd.f32 %v164_v28, %v121_v6 }
  0x1f   :  { %v126_v15 = vrot.slane %v125_v26, 1  ;;  %v132_v36 = vrot.slane %v131_v29, 1  ;;  %v138_v37 = vrot.slane %v137_v30, 1  ;;  %v160_v39 = vrot.slane %v159_v32, 2 }
  0x20   :  { %v144_v38 = vrot.slane %v143_v31, 1  ;;  %v150_v41 = vrot.slane %v149_v33, 1  ;;  %v156_v42 = vrot.slane %v155_v34, 1  ;;  %v166_v43 = vrot.slane %v165_v35, 2 }
  0x21   :  { %v127_v40 = vadd.f32 %v126_v15, %v125_v26  ;;  %v133_v44 = vadd.f32 %v132_v36, %v131_v29  ;;  %v139_v45 = vadd.f32 %v138_v37, %v137_v30  ;;  %v161_v47 = vadd.f32 %v160_v39, %v159_v32 }
  0x22   :  { %v145_v46 = vadd.f32 %v144_v38, %v143_v31  ;;  %v151_v48 = vadd.f32 %v150_v41, %v149_v33  ;;  %v167_v49 = vadd.f32 %v166_v43, %v165_v35  ;;  %v193_v50 = vmul.f32 0.125, %v109_v18 }
  0x23   :  { %v157_v51 = vadd.f32 %v156_v42, %v155_v34  ;;  %v162_v52 = vrot.slane %v161_v47, 1  ;;  %v178_v53 = vsel %vm96_vm0, %v133_v44, %v127_v40 }
  0x24   :  { %v168_v54 = vrot.slane %v167_v49, 1  ;;  %v179_v55 = vsel %vm98_vm1, %v139_v45, %v178_v53  ;;  %v194_v60 = vmul.f32 %v193_v50, %v109_v18 }
  0x25   :  { %v163_v56 = vadd.f32 %v162_v52, %v161_v47  ;;  %v180_v57 = vsel %vm100_vm2, %v145_v46, %v179_v55 }
  0x26   :  { %v169_v58 = vadd.f32 %v168_v54, %v167_v49  ;;  %v181_v59 = vsel %vm102_vm3, %v151_v48, %v180_v57 }
  0x27   :  { %v182_v61 = vsel %vm104_vm4, %v157_v51, %v181_v59 }
  0x28   :  { %v183_v62 = vsel %vm106_vm5, %v163_v56, %v182_v61 }
  0x29   :  { %v184_v63 = vsel %vm108_vm6, %v169_v58, %v183_v62 }
  0x2a   :  { %v195_v0 = vsub.f32 %v184_v63, %v194_v60 }
  0x2c   :  { %v196_v1 = vmul.f32 0.14285715, %v195_v0 }
  0x2e   :  { %v197_v6 = vmax.f32 %v196_v1, 0.0 }
  0x30   :  { %233 = vrsqrt.f32 %v197_v6  ;;  %vm205_vm7 = vcmp.eq.f32.partialorder %v197_v6, inf  ;;  %v208_v4 = vand.u32 2147483648, %v197_v6  ;;  %vm207_vm8 = vcmp.eq.f32.partialorder %v197_v6, 0.0 }
  0x36   :  { %v234_v2 = vpop.eup %233 }
  0x37   :  { %v199_v7 = vmul.f32 %v234_v2, %v197_v6 }
  0x39   :  { %v200_v3 = vmul.f32 %v234_v2, %v199_v7 }
  0x3b   :  { %v201_v8 = vmul.f32 0.5, %v200_v3 }
  0x3d   :  { %v202_v12 = vsub.f32 1.5, %v201_v8 }
  0x3f   :  { %v203_v13 = vmul.f32 %v234_v2, %v202_v12 }
  0x41   :  { %v204_v14 = vmul.f32 %v203_v13, %v197_v6 }
  0x43   :  { %v206_v5 = vsel %vm205_vm7, %v197_v6, %v204_v14 }
  0x44   :  { %v209_v16 = vsel %vm207_vm8, %v208_v4, %v206_v5 }
  0x45   :  { %v210_v17 = vadd.f32 %v209_v16, %v193_v50 }
  0x47   :  { %211 = vst [vmem:[#allocation7] sm:$0xff] %v210_v17 }
  0x48   :  { %222 = dma.vmem_to_hbm [thread:$0]  %s218_s13, 128, %s220_s16, [#allocation6]  }
  0x49   :  { %285 = dma.done.wait [#allocation6], 128  }
  0x4a   :  { %286 = vsyncadd [#allocation6], 4294967168 }
  0x4b   :  { %227 = vsyncpa [#allocation5], 1 }
  0x4c   :  { %228 = vsyncpa [#allocation6], 1 }

</bundles_post_ra>
